<compile_context>
chip_gen: v5e
topology: v5e:2x2
jax: 0.10.0
libtpu: 0.0.40
codegen_flags: <defaults>
</compile_context>

<pallas_src>
import jax
import jax.numpy as jnp
from jax.experimental import pallas as pl
from jax.experimental.pallas import tpu as pltpu

NUM_CLASSES = 10
SMALL_INPUT_ELEMS = 1 << 18   # below this, plain XLA is faster than a kernel launch


def _round_up(x: int, m: int) -> int:
    return ((x + m - 1) // m) * m


def _ce_loss_xla_small(pre_out: jax.Array, labels: jax.Array) -> jax.Array:
    """Small-batch fast path: same math, no pallas_call / label-sidecar overhead."""
    p = pre_out.astype(jnp.float32)
    onehot = labels.astype(jnp.int32)[:, None] == jnp.arange(NUM_CLASSES, dtype=jnp.int32)
    return -jnp.sum(jnp.log(jnp.where(onehot, p, 1.0 - p))) / NUM_CLASSES


def _make_ce_kernel(n: int, tile: int, c: int, need_row_mask: bool):
    def kernel(lab_ref, p_ref, out_ref):
        # (tile, c) block, upcast in-kernel (bf16-safe, no wrapper-side HBM copy).
        p = p_ref[...].astype(jnp.float32)
        lab = lab_ref[...].astype(jnp.int32)                       # (tile, 1) int8 -> int32
        cls = jax.lax.broadcasted_iota(jnp.int32, (tile, c), 1)
        onehot = cls == lab                                        # broadcast over lanes (VPU)

        # One-hot BCE with exactly ONE transcendental per element:
        #   -(y*log p + (1-y)*log(1-p)) == -log( y ? p : 1-p )
        q = jnp.where(onehot, p, 1.0 - p)
        logs = jnp.log(q)

        if need_row_mask:
            # Ragged last block: out-of-range rows hold unspecified data -> zero them.
            row = jax.lax.broadcasted_iota(jnp.int32, (tile, c), 0) + pl.program_id(0) * tile
            logs = jnp.where(row < n, logs, 0.0)

        # Fold rows to an (8, c) partial using 4 independent accumulation chains
        # (leading-dim reshapes are free; all adds are VPU work under the EUP/DMA bound).
        part4 = jnp.sum(logs.reshape(tile // 32, 4, 8, c), axis=0)   # (4, 8, c)
        out_ref[...] = jnp.sum(part4, axis=0)                        # (8, c)
    return kernel


def ce_loss(pre_out: jax.Array, labels: jax.Array, *, tile_n: int = 8192,
            small_input_fallback: bool = True) -> jax.Array:
    """pre_out: (N, 10) probabilities in (0, 1); labels: (N,) integer class ids."""
    n, c = pre_out.shape
    assert c == NUM_CLASSES

    if small_input_fallback and n * c <= SMALL_INPUT_ELEMS:
        return _ce_loss_xla_small(pre_out, labels)

    # Labels sidecar: class ids 0..9 fit in int8; (N, 1) int8 keeps the label DMA at
    # ~N*128 B (sublane-tiled) on top of the unavoidable N*512 B padded data read.
    lab2d = labels.astype(jnp.int8).reshape(n, 1)

    # Tile sizing: multiple of 32 rows (int8 sublane tiling), capped so num_tiles >= 2
    # (lets the "parallel" grid axis use both v7x TensorCores; no-op on v5e/v6e).
    tile = min(tile_n, _round_up(pl.cdiv(n, 2), 32))
    tile = _round_up(max(tile, 32), 32)
    num_tiles = pl.cdiv(n, tile)
    need_row_mask = (n % tile) != 0

    partials = pl.pallas_call(
        _make_ce_kernel(n, tile, c, need_row_mask),
        out_shape=jax.ShapeDtypeStruct((num_tiles * 8, c), jnp.float32),
        grid_spec=pltpu.PrefetchScalarGridSpec(
            num_scalar_prefetch=0,
            grid=(num_tiles,),
            in_specs=[
                pl.BlockSpec((tile, 1), lambda i: (i, 0)),   # labels (int8 sidecar)
                pl.BlockSpec((tile, c), lambda i: (i, 0)),   # probabilities, native dtype
            ],
            out_specs=pl.BlockSpec((8, c), lambda i: (i, 0)),
        ),
        compiler_params=pltpu.CompilerParams(
            dimension_semantics=("parallel",),
            vmem_limit_bytes=48 * 1024 * 1024,
        ),
    )(lab2d, pre_out)

    # loss = sum_N mean_C(-log q) = -(1/C) * sum_all log q
    return -jnp.sum(partials) / c


def ce_loss_ref(pre_out, labels):
    y = jax.nn.one_hot(labels, NUM_CLASSES, dtype=jnp.float32)
    per_elem = -(y * jnp.log(pre_out) + (1.0 - y) * jnp.log(1.0 - pre_out))
    return jnp.sum(jnp.mean(per_elem, axis=1))


if __name__ == "__main__":
    key = jax.random.PRNGKey(0)
    k_p, k_l = jax.random.split(key)

    # probabilities strictly inside (0, 1) so log() is finite
    batch = 64
    pre_out = jax.random.uniform(
        k_p, (batch, NUM_CLASSES), dtype=jnp.float32, minval=0.05, maxval=0.95
    )
    labels = jax.random.randint(k_l, (batch,), 0, NUM_CLASSES, dtype=jnp.int32)

    # Force the Pallas path (fallback off) and verify against the reference.
    loss = ce_loss(pre_out, labels, small_input_fallback=False)
    jax.block_until_ready(loss)
    ref = ce_loss_ref(pre_out, labels)
    assert jnp.allclose(loss, ref, rtol=1e-5, atol=1e-4), (loss, ref)

    # Second shape: exercises multi-tile grid + ragged-last-tile in-kernel masking.
    k_p2, k_l2 = jax.random.split(jax.random.PRNGKey(1))
    batch2 = 200
    pre_out2 = jax.random.uniform(
        k_p2, (batch2, NUM_CLASSES), dtype=jnp.float32, minval=0.05, maxval=0.95
    )
    labels2 = jax.random.randint(k_l2, (batch2,), 0, NUM_CLASSES, dtype=jnp.int32)
    loss2 = ce_loss(pre_out2, labels2, tile_n=32, small_input_fallback=False)
    jax.block_until_ready(loss2)
    ref2 = ce_loss_ref(pre_out2, labels2)
    assert jnp.allclose(loss2, ref2, rtol=1e-5, atol=1e-4), (loss2, ref2)

    # Small-input XLA fast path (default) should also match.
    loss_fb = ce_loss(pre_out, labels)
    jax.block_until_ready(loss_fb)
    assert jnp.allclose(loss_fb, ref, rtol=1e-5, atol=1e-4), (loss_fb, ref)

    print("KERNEL_OK")
</pallas_src>

<mosaic_0001>
module attributes {stable_mosaic.version = 11 : i64} {
  func.func @kernel(%arg0: i32, %arg1: memref<32x1xi8, #tpu.memory_space<vmem>>, %arg2: memref<32x10xf32, #tpu.memory_space<vmem>>, %arg3: memref<8x10xf32, #tpu.memory_space<vmem>>) attributes {dimension_semantics = [#tpu.dimension_semantics<parallel>], iteration_bounds = array<i64: 2>, scalar_prefetch = 0 : i64, scratch_operands = 0 : i64, tpu.core_type = #tpu.core_type<tc>, window_params = [{transform_indices = @transform_0, window_bounds = array<i64: 32, 1>}, {transform_indices = @transform_1, window_bounds = array<i64: 32, 10>}, {transform_indices = @transform_2, window_bounds = array<i64: 8, 10>}]} {
    %c0 = arith.constant 0 : index
    %c0_0 = arith.constant 0 : index
    %0 = vector.load %arg2[%c0, %c0_0] : memref<32x10xf32, #tpu.memory_space<vmem>>, vector<32x10xf32>
    %c0_1 = arith.constant 0 : index
    %c0_2 = arith.constant 0 : index
    %1 = vector.load %arg1[%c0_1, %c0_2] : memref<32x1xi8, #tpu.memory_space<vmem>>, vector<32x1xi8>
    %2 = arith.extsi %1 : vector<32x1xi8> to vector<32x1xi32>
    %3 = tpu.iota {dimensions = array<i32: 1>} : vector<32x10xi32>
    %4 = vector.broadcast %2 : vector<32x1xi32> to vector<32x10xi32>
    %5 = arith.cmpi eq, %3, %4 : vector<32x10xi32>
    %cst = arith.constant 1.000000e+00 : f32
    %6 = vector.broadcast %cst : f32 to vector<32x10xf32>
    %7 = arith.subf %6, %0 : vector<32x10xf32>
    %8 = arith.select %5, %0, %7 : vector<32x10xi1>, vector<32x10xf32>
    %9 = math.log %8 : vector<32x10xf32>
    %10 = vector.shape_cast %9 : vector<32x10xf32> to vector<1x4x8x10xf32>
    %cst_3 = arith.constant dense<0.000000e+00> : vector<4x8x10xf32>
    %11 = vector.multi_reduction <add>, %10, %cst_3 [0] : vector<1x4x8x10xf32> to vector<4x8x10xf32>
    %cst_4 = arith.constant dense<0.000000e+00> : vector<8x10xf32>
    %12 = vector.multi_reduction <add>, %11, %cst_4 [0] : vector<4x8x10xf32> to vector<8x10xf32>
    %c0_5 = arith.constant 0 : index
    %c0_6 = arith.constant 0 : index
    %13 = vector.load %arg3[%c0_5, %c0_6] : memref<8x10xf32, #tpu.memory_space<vmem>>, vector<8x10xf32>
    tpu.vector_store %arg3[%c0_5, %c0_6], %12 {strides = array<i32>} : memref<8x10xf32, #tpu.memory_space<vmem>>, vector<8x10xf32>,
    return
  }
  func.func @transform_0(%arg0: i32) -> (i32, i32) {
    %c0_i32 = arith.constant 0 : i32
    %c0_i32_0 = arith.constant 0 : i32
    return %arg0, %c0_i32 : i32, i32
  }
  func.func @transform_1(%arg0: i32) -> (i32, i32) {
    %c0_i32 = arith.constant 0 : i32
    %c0_i32_0 = arith.constant 0 : i32
    return %arg0, %c0_i32 : i32, i32
  }
  func.func @transform_2(%arg0: i32) -> (i32, i32) {
    %c0_i32 = arith.constant 0 : i32
    %c0_i32_0 = arith.constant 0 : i32
    return %arg0, %c0_i32 : i32, i32
  }
}

</mosaic_0001>

<bundles_post_ra>
// kernel: tpu_custom_call.1
= control target key start
LH: loop header
LB: loop body
LE: loop exit
PB: predicated region body
PF: predicated region fallthrough
CT: control target
= control target key end

     0   :  { %7 = vsyncpa [#allocation3], 0  ;;  %s556_s0 = inlined_call_operand.vmem [shape: s8[64,1], index: 0, kind: input, shape index: {}]   ;;  %s557_s1 = inlined_call_operand.vmem [shape: f32[64,10], index: 1, kind: input, shape index: {}]   ;;  %s558_s2 = inlined_call_operand.hbm [shape: f32[16,10], index: 2, kind: output, shape index: {}]  }
   0x1   :  { %9 = vsyncpa [#allocation3 + $0x1], 0  ;;  %s464_s9 = smov 0   ;;  %s466_s10 = smov 0  }
   0x2   :  { %s468_s11 = smov 0   ;;  %s470_s12 = smov 0  }
   0x3 LB: > { %s485_s13 = sadd.s32 4294967295, %s446_s12   ;;  %s312_s14 = sadd.s32 4294967294, %s446_s12   ;;  %s446_s12 = sphi %s470_s12, %s564_s12   ;;  %s442_s11 = sphi %s468_s11, %s563_s11   ;;  %s438_s10 = sphi %s466_s10, %s562_s10   ;;  %s434_s9 = sphi %s464_s9, %s561_s9  }
   0x4   : > { %s489_s15 = sadd.s32 1, %s446_s12   ;;  %s74_s16 = sadd.s32 1, %s442_s11 }
   0x5   : > { %s71_s17 = ssub.s32 %s446_s12, %s489_s15  ;;  %p84_p0 = scmp.ne.s32.totalorder %s442_s11, %s438_s10 }
   0x6   : > { %p72_p1 = scmp.eq.s32.totalorder %s71_s17, 0  ;;  %p85_p2 = scmp.eq.s32.totalorder %s485_s13, 1 }
   0x7   : > { %p90_p3 = scmp.ne.s32.totalorder %s438_s10, %s434_s9  ;;  %p91_p4 = scmp.eq.s32.totalorder %s312_s14, 1 }
   0x8   : > { %s500_s18 = scalar_select %p72_p1, %s442_s11, %s74_s16  }
   0x9   : > { %p502_p5 = por %p85_p2, %p84_p0  ;;  %p506_p6 = por %p91_p4, %p90_p3 }
   0xa   : > { %p315_p7 = scmp.ge.s32.totalorder %s446_s12, 1  ;;  %p127_p8 = scmp.lt.s32.totalorder %s446_s12, 3 }
   0xc   : > { %p128_p9 = pnand %p315_p7, %p127_p8 }
   0xd   : > { %s317_s21 = sshll.u32 (!%p128_p9), %s485_s13, 2  ;;  %s151_s30 = sand.u32 (!%p128_p9), 1, %s438_s10  }
   0xe   : > { %131 = sbr.rel (%p128_p9) target bundleno = 170 (0xaa), region = 28  ;;  %p155_p10 = scmp.lt.s32.totalorder (!%p128_p9), %s317_s21, 7 }
   0xf   : > { %s316_s3 = sshll.u32 (!%p128_p9), %s151_s30, 3  ;;  %s322_s4 = sshll.u32 (!%p128_p9), %s485_s13, 3 }
  0x10   : > { %s236_s7 = scalar_lea.hbm (!%p128_p9), %s558_s2, %s322_s4  ;;  %s153_s8 = scalar_lea.vmem (!%p128_p9), [#allocation2], %s316_s3 }
  0x11   : > { %s238_s14 = sshll.u32 (!%p128_p9), %s153_s8, 4  ;;  %s240_s13 = sshll.u32 (!%p128_p9), %s236_s7, 4  ;;  %s239_s14 = int_to_ptr.vmem [resolvable:$true] %s238_s14  ;;  %s241_s13 = int_to_ptr.hbm [resolvable:$true] %s240_s13 }
  0x12   : > { %s226_s16 = scalar_lea.sflag (!%p128_p9), [#allocation3], %s151_s30  ;;  %s398_s17 = sshra.s32 (!%p128_p9), %s241_s13, 4  ;;  %s399_s17 = int_to_ptr.hbm [resolvable:$true] %s398_s17 }
  0x13   : > { %v448_v0 = vmov 0   ;;  %s566_s21 = smov (!%p155_p10, %s317_s21), 7  ;;  %v178_v6 = vlaneseq  ;;  %vm216_vm4 = vcmask 80896   ;;  %s404_s24 = scalar_lea.hbm %s558_s2, 16 }
  0x14   : > { %375 = vset.pattern.permute.xlu1 %v448_v0  ;;  %374 = vset.pattern.permute.xlu0 %v448_v0  ;;  %s318_s22 = sshll.u32 %s566_s21, 1  ;;  %s320_s26 = sshll.u32 %s566_s21, 3 }
  0x15   : > { %s158_s25 = scalar_lea.vmem %s556_s0, %s318_s22  ;;  %s164_s29 = scalar_lea.vmem %s557_s1, %s320_s26  ;;  %v179_v7 = vand.u32 127, %v178_v6 }
  0x16   : > { %v333_v1 = vld [vmem:[%s158_s25] sm:$0xff]   ;;  %v168_v9 = vld [vmem:[%s164_s29 + $0x10] sm:$0xff]  ;;  %v169_v14 = vld [vmem:[%s164_s29 + $0x18] sm:$0xff]  ;;  %s400_s21 = scalar_lea.hbm %s399_s17, 8  ;;  %p405_p0 = scmp.lt.s32.totalorder %s399_s17, %s558_s2 }
  0x17   : > { %v331_v2 = vunpack.c.2.s8 %v333_v1  ;;  %v327_v3 = vunpack.c.0.s8 %v333_v1  ;;  %v332_v4 = vunpack.c.3.s8 %v333_v1  ;;  %v328_v5 = vunpack.c.1.s8 %v333_v1  ;;  %v166_v8 = vld [vmem:[%s164_s29] sm:$0xff]  ;;  %v167_v15 = vld [vmem:[%s164_s29 + $0x8] sm:$0xff]  ;;  %p401_p11 = scmp.ne.s32.totalorder %s399_s17, %s400_s21  ;;  %p406_p1 = scmp.lt.s32.totalorder %s404_s24, %s400_s21 }
  0x18   : > { %v196_v12 = vsub.f32 1.0, %v166_v8  ;;  %v198_v13 = vsub.f32 1.0, %v168_v9  ;;  %v199_v17 = vsub.f32 1.0, %v169_v14  ;;  %v197_v18 = vsub.f32 1.0, %v167_v15 }
  0x19   : > { %187 = vperm.xlu1 %375, %v331_v2   ;;  %181 = vperm.xlu0 %374, %v327_v3   ;;  %p402_p12 = pnand %p401_p11, %p502_p5  ;;  %p407_p2 = por %p406_p1, %p405_p0 }
  0x1b   : > { %p403_p13 = pneg %p402_p12 }
  0x1d   : > { %p408_p3 = pnand %p407_p2, %p403_p13 }
  0x21   : > { %190 = vperm.xlu1 %375, %v332_v4   ;;  %184 = vperm.xlu0 %374, %v328_v5  }
  0x8b   : > { %v188_v10 = vpop.permute.xlu1 %187  ;;  %v182_v11 = vpop.permute.xlu0 %181 }
  0x8c   : > { %vm192_vm0 = vcmp.eq.s32.totalorder %v179_v7, %v182_v11  ;;  %vm194_vm1 = vcmp.eq.s32.totalorder %v179_v7, %v188_v10 }
  0x8d   : > { %v200_v16 = vsel %vm192_vm0, %v166_v8, %v196_v12  ;;  %v202_v19 = vsel %vm194_vm1, %v168_v9, %v198_v13 }
  0x8e   : > { %376 = vlog2.f32 %v200_v16 }
  0x8f   : > { %378 = vlog2.f32 %v202_v19 }
  0x93   : > { %v191_v20 = vpop.permute.xlu1 %190  ;;  %v185_v21 = vpop.permute.xlu0 %184 }
  0x94   : > { %vm195_vm2 = vcmp.eq.s32.totalorder %v179_v7, %v191_v20  ;;  %vm193_vm3 = vcmp.eq.s32.totalorder %v179_v7, %v185_v21  ;;  %v377_v24 = vpop.eup %376 }
  0x95   : > { %v203_v22 = vsel %vm195_vm2, %v169_v14, %v199_v17  ;;  %v201_v23 = vsel %vm193_vm3, %v167_v15, %v197_v18  ;;  %v379_v25 = vpop.eup %378  ;;  %v205_v27 = vmul.f32 0.6931472, %v377_v24 }
  0x96   : > { %380 = vlog2.f32 %v203_v22  ;;  %v209_v29 = vmul.f32 0.6931472, %v379_v25 }
  0x97   : > { %382 = vlog2.f32 %v201_v23  ;;  %v217_v31 = vsel %vm216_vm4, %v205_v27, 0.0 }
  0x98   : > { %v220_v35 = vsel %vm216_vm4, %v209_v29, 0.0 }
  0x9c   : > { %v381_v26 = vpop.eup %380 }
  0x9d   : > { %v383_v28 = vpop.eup %382  ;;  %v211_v32 = vmul.f32 0.6931472, %v381_v26 }
  0x9e   : > { %v207_v30 = vmul.f32 0.6931472, %v383_v28 }
  0x9f   : > { %v222_v37 = vsel %vm216_vm4, %v211_v32, 0.0 }
  0xa0   : > { %v218_v33 = vsel %vm216_vm4, %v207_v30, 0.0 }
  0xa1   : > { %v219_v34 = vadd.f32 %v218_v33, %v217_v31 }
  0xa3   : > { %v221_v36 = vadd.f32 %v220_v35, %v219_v34 }
  0xa5   : > { %v223_v38 = vadd.f32 %v222_v37, %v221_v36 }
  0xa7   : > { %224 = vst.msk [vmem:[%s153_s8] sm:$0xff] %vm216_vm4, %v223_v38 }
  0xa8   : > { %411 = shalt.err (!%p408_p3)
}
  0xa9   : > { %334 = dma.vmem_to_hbm [thread:$0]  (%p502_p5), %s239_s14, 128, %s241_s13, %s226_s16  }
  0xaa PF: > { %p340_p4 = scmp.ge.s32.totalorder %s446_s12, 2  ;;  %s252_s27 = sand.u32 1, %s434_s9  }
  0xab   : > { %s253_s28 = scalar_lea.sflag [#allocation3], %s252_s27 }
  0xac   : > { %p337_p7 = pnand %p340_p4, %p506_p6 }
  0xae   : > { %p338_p8 = pneg %p337_p7 }
  0xb0   : > { %429 = dma.done.wait (%p338_p8), %s253_s28, 128  }
  0xb1   : > { %431 = vsyncadd (%p338_p8), %s253_s28, 4294967168  ;;  %p12_p9 = scmp.ge.s32.totalorder %s489_s15, 4   ;;  %s561_s9 = smov %s438_s10 }
  0xb2   : > { %s562_s10 = smov %s442_s11  ;;  %s563_s11 = smov %s500_s18 }
  0xb3   : > { %s564_s12 = smov %s489_s15  ;;  %14 = sbr.rel (!%p12_p9) target bundleno = 3 (0x3), region = 66 }
  0xb8   :  { %259 = vsyncpa [#allocation3], 1 }
  0xb9   :  { %261 = vsyncpa [#allocation3 + $0x1], 1 }

</bundles_post_ra>
